<compile_context>
chip_gen: v6e
topology: v6e:2x2x1
jax: 0.10.0
libtpu: 0.0.40
codegen_flags: <defaults>
</compile_context>

<pallas_src>
import functools

import jax
import jax.numpy as jnp
from jax.experimental import pallas as pl
from jax.experimental.pallas import tpu as pltpu


def _res2_kernel(x_ref, w_ref, bn_scale_ref, bn_shift_ref, o_ref, *scratch,
                 bb: int, width: int, nums: int, scale: int,
                 ksize: int, dilation: int, padding: int):
    t = o_ref.shape[-1]
    pad_ref = scratch[0] if scratch else None

    # Zero the halo columns of the persistent padded slab once per grid step.
    if padding > 0:
        zeros_edge = jnp.zeros((width, padding), jnp.bfloat16)
        pad_ref[:, :padding] = zeros_edge
        pad_ref[:, padding + t:] = zeros_edge

    for b in range(bb):                                   # static unroll over fused batch
        sp = None
        for i in range(nums):                             # nums = scale-1, small, unrolled
            chunk = x_ref[b, i * width:(i + 1) * width, :].astype(jnp.float32)
            sp = chunk if i == 0 else sp + chunk           # residual chain in f32

            if ksize == 1:
                stacked = sp.astype(jnp.bfloat16)          # (W, T)
            else:
                # Store the branch input into the padded slab (halo already zero),
                # then gather the k dilated taps as static slices and stack them
                # along sublanes -> single (k*W, T) MXU operand.
                pad_ref[:, padding:padding + t] = sp.astype(jnp.bfloat16)
                stacked = jnp.concatenate(
                    [pad_ref[:, j * dilation:j * dilation + t] for j in range(ksize)],
                    axis=0)                                # (k*W, T) bf16

            # One fused matmul per branch: (W, k*W) @ (k*W, T), f32 accumulation.
            acc = jnp.dot(w_ref[i], stacked, preferred_element_type=jnp.float32)

            y = jnp.maximum(acc, 0.0)                      # ReLU
            sp = y * bn_scale_ref[i] + bn_shift_ref[i]     # folded eval-mode BN (f32)
            o_ref[b, i * width:(i + 1) * width, :] = sp.astype(o_ref.dtype)

        if scale != 1:                                     # passthrough last chunk, no cast pass
            o_ref[b, nums * width:, :] = x_ref[b, nums * width:, :].astype(o_ref.dtype)


def _pick_batch_block(b, c, t, itemsize, target_bytes=2 << 20):
    """Fuse several batch elements per grid step for tiny slabs."""
    for cand in range(b, 0, -1):
        if b % cand == 0 and cand * c * t * itemsize <= target_bytes:
            return cand
    return 1


def res2conv1d_relu_bn(x, conv_w, bn_gamma, bn_beta, bn_mean, bn_var, *,
                       scale: int, kernel_size: int = 1, dilation: int = 1,
                       padding: int = 0, eps: float = 1e-5):
    """Pallas TPU implementation of Res2Conv1dReluBn.forward (eval-mode BN).

    x:      (B, C, T)
    conv_w: (nums, width, width, kernel_size)   -- per-branch Conv1d weights (OIH)
    bn_*:   (nums, width)                       -- per-branch BatchNorm1d params/stats
    """
    b, c, t = x.shape
    assert c % scale == 0, f"{c} % {scale} != 0"
    width = c // scale
    nums = scale if scale == 1 else scale - 1
    # stride == 1 and length-preserving conv (needed for the channel concat).
    assert 2 * padding == dilation * (kernel_size - 1), \
        "conv must be length-preserving (2*padding == dilation*(kernel_size-1))"
    assert conv_w.shape == (nums, width, width, kernel_size)

    # Fold eval-mode BatchNorm1d into per-channel scale/shift: y = a*x + b.
    a = bn_gamma.astype(jnp.float32) / jnp.sqrt(bn_var.astype(jnp.float32) + eps)
    shift = bn_beta.astype(jnp.float32) - bn_mean.astype(jnp.float32) * a
    bn_scale = a[..., None]                                # (nums, W, 1)
    bn_shift = shift[..., None]                            # (nums, W, 1)

    # Fused-tap weights: (nums, O, I, K) -> (nums, O, K, I) -> (nums, O, K*I), bf16 for MXU.
    w_fused = jnp.transpose(conv_w, (0, 1, 3, 2)).reshape(
        nums, width, kernel_size * width).astype(jnp.bfloat16)

    bb = _pick_batch_block(b, c, t, x.dtype.itemsize)
    grid = (b // bb,)

    pad_cols = t + 2 * padding
    scratch_shapes = []
    if kernel_size > 1:
        scratch_shapes.append(pltpu.VMEM((width, pad_cols), jnp.bfloat16))

    # VMEM budget: double-buffered in/out blocks + resident weights/BN + scratch.
    in_block = bb * c * t * x.dtype.itemsize
    out_block = bb * c * t * x.dtype.itemsize
    resident = (w_fused.size * 2 + 2 * bn_scale.size * 4
                + (width * pad_cols * 2 if kernel_size > 1 else 0))
    needed = 2 * (in_block + out_block) + resident + (2 << 20)
    vmem_limit = int(min(max(needed, 32 << 20), 128 << 20))

    kernel = functools.partial(
        _res2_kernel, bb=bb, width=width, nums=nums, scale=scale,
        ksize=kernel_size, dilation=dilation, padding=padding)

    out = pl.pallas_call(
        kernel,
        out_shape=jax.ShapeDtypeStruct((b, c, t), x.dtype),
        grid=grid,
        in_specs=[
            pl.BlockSpec((bb, c, t), lambda i: (i, 0, 0)),
            pl.BlockSpec((nums, width, kernel_size * width), lambda i: (0, 0, 0)),
            pl.BlockSpec((nums, width, 1), lambda i: (0, 0, 0)),
            pl.BlockSpec((nums, width, 1), lambda i: (0, 0, 0)),
        ],
        out_specs=pl.BlockSpec((bb, c, t), lambda i: (i, 0, 0)),
        scratch_shapes=scratch_shapes,
        compiler_params=pltpu.CompilerParams(
            dimension_semantics=("parallel",),
            vmem_limit_bytes=vmem_limit),
    )(x, w_fused, bn_scale, bn_shift)
    return out


def _reference(x, conv_w, bn_gamma, bn_beta, bn_mean, bn_var, *,
               scale, kernel_size, dilation, padding, eps=1e-5,
               conv_dtype=jnp.float32):
    """Plain-JAX reference mirroring the PyTorch forward (eval-mode BN).

    conv_dtype=jnp.bfloat16 matches the kernel's MXU recipe (bf16 operands,
    f32 accumulation); conv_dtype=jnp.float32 is the full-precision reference.
    """
    _, c, _ = x.shape
    width = c // scale
    nums = scale if scale == 1 else scale - 1
    spx = [x[:, i * width:(i + 1) * width, :] for i in range(scale)]
    outs = []
    sp = None
    for i in range(nums):
        sp = spx[i] if i == 0 else sp + spx[i]
        y = jax.lax.conv_general_dilated(
            sp.astype(conv_dtype), conv_w[i].astype(conv_dtype),
            window_strides=(1,), padding=[(padding, padding)],
            rhs_dilation=(dilation,),
            dimension_numbers=("NCH", "OIH", "NCH"),
            preferred_element_type=jnp.float32,
            precision=jax.lax.Precision.HIGHEST)
        y = jnp.maximum(y, 0.0)
        a = bn_gamma[i] / jnp.sqrt(bn_var[i] + eps)
        bsh = bn_beta[i] - bn_mean[i] * a
        sp = y * a[None, :, None] + bsh[None, :, None]
        outs.append(sp)
    if scale != 1:
        outs.append(spx[nums])
    return jnp.concatenate(outs, axis=1)


if __name__ == "__main__":
    key = jax.random.PRNGKey(0)
    B, C, T = 2, 32, 128
    scale = 4
    width = C // scale
    nums = scale - 1

    configs = [
        dict(kernel_size=1, dilation=1, padding=0),   # module defaults
        dict(kernel_size=3, dilation=2, padding=2),   # ECAPA-TDNN style usage
    ]

    for idx, cfg in enumerate(configs):
        k = cfg["kernel_size"]
        keys = jax.random.split(jax.random.fold_in(key, idx), 6)
        x = jax.random.normal(keys[0], (B, C, T), dtype=jnp.float32)
        conv_w = 0.3 * jax.random.normal(keys[1], (nums, width, width, k),
                                         dtype=jnp.float32)
        gamma = 1.0 + 0.1 * jax.random.normal(keys[2], (nums, width), dtype=jnp.float32)
        beta = 0.1 * jax.random.normal(keys[3], (nums, width), dtype=jnp.float32)
        mean = 0.1 * jax.random.normal(keys[4], (nums, width), dtype=jnp.float32)
        var = jax.random.uniform(keys[5], (nums, width), dtype=jnp.float32,
                                 minval=0.5, maxval=1.5)

        out = res2conv1d_relu_bn(x, conv_w, gamma, beta, mean, var,
                                 scale=scale, **cfg)
        out = jax.block_until_ready(out)
        assert out.shape == (B, C, T), out.shape

        # Matched-precision reference (bf16 conv operands, f32 accumulation).
        ref_bf16 = _reference(x, conv_w, gamma, beta, mean, var, scale=scale,
                              conv_dtype=jnp.bfloat16, **cfg)
        assert jnp.allclose(out, ref_bf16, atol=2e-2, rtol=2e-2), \
            f"mismatch vs bf16-matched reference for config {cfg}"

        # Full-f32 reference: bf16-MXU kernel should still agree loosely.
        ref_f32 = _reference(x, conv_w, gamma, beta, mean, var, scale=scale,
                             conv_dtype=jnp.float32, **cfg)
        assert jnp.allclose(out, ref_f32, atol=1e-1, rtol=1e-1), \
            f"mismatch vs f32 reference for config {cfg}"

    print("KERNEL_OK")
</pallas_src>

<mosaic_0001>
module attributes {stable_mosaic.version = 11 : i64} {
  func.func @_res2_kernel(%arg0: i32, %arg1: memref<2x32x128xf32, #tpu.memory_space<vmem>>, %arg2: memref<3x8x8xbf16, #tpu.memory_space<vmem>>, %arg3: memref<3x8x1xf32, #tpu.memory_space<vmem>>, %arg4: memref<3x8x1xf32, #tpu.memory_space<vmem>>, %arg5: memref<2x32x128xf32, #tpu.memory_space<vmem>>) attributes {dimension_semantics = [#tpu.dimension_semantics<parallel>], iteration_bounds = array<i64: 1>, scalar_prefetch = 0 : i64, scratch_operands = 0 : i64, tpu.core_type = #tpu.core_type<tc>, window_params = [{transform_indices = @transform_0, window_bounds = array<i64: 2, 32, 128>}, {pipeline_mode = #tpu.pipeline_mode<synchronous>, transform_indices = @transform_1, window_bounds = array<i64: 3, 8, 8>}, {pipeline_mode = #tpu.pipeline_mode<synchronous>, transform_indices = @transform_2, window_bounds = array<i64: 3, 8, 1>}, {pipeline_mode = #tpu.pipeline_mode<synchronous>, transform_indices = @transform_3, window_bounds = array<i64: 3, 8, 1>}, {transform_indices = @transform_4, window_bounds = array<i64: 2, 32, 128>}]} {
    %c0 = arith.constant 0 : index
    %c0_0 = arith.constant 0 : index
    %c0_1 = arith.constant 0 : index
    %0 = vector.load %arg1[%c0, %c0_0, %c0_1] : memref<2x32x128xf32, #tpu.memory_space<vmem>>, vector<1x8x128xf32>
    %1 = vector.shape_cast %0 : vector<1x8x128xf32> to vector<8x128xf32>
    %2 = arith.truncf %1 : vector<8x128xf32> to vector<8x128xbf16>
    %c0_2 = arith.constant 0 : index
    %c0_3 = arith.constant 0 : index
    %c0_4 = arith.constant 0 : index
    %3 = vector.load %arg2[%c0_2, %c0_3, %c0_4] : memref<3x8x8xbf16, #tpu.memory_space<vmem>>, vector<1x8x8xbf16>
    %4 = vector.shape_cast %3 : vector<1x8x8xbf16> to vector<8x8xbf16>
    %cst = arith.constant dense<0.000000e+00> : vector<8x128xf32>
    %5 = tpu.matmul %4, %2, %cst {dimension_numbers = #tpu.dot_dimension_numbers<[1], [0], [0], [1], [0, 0, 1, 1], [], []>} : vector<8x8xbf16>, vector<8x128xbf16>, vector<8x128xf32> -> vector<8x128xf32>
    %cst_5 = arith.constant 0.000000e+00 : f32
    %6 = vector.broadcast %cst_5 : f32 to vector<8x128xf32>
    %7 = arith.maximumf %5, %6 : vector<8x128xf32>
    %c0_6 = arith.constant 0 : index
    %c0_7 = arith.constant 0 : index
    %c0_8 = arith.constant 0 : index
    %8 = vector.load %arg3[%c0_6, %c0_7, %c0_8] : memref<3x8x1xf32, #tpu.memory_space<vmem>>, vector<1x8x1xf32>
    %9 = vector.shape_cast %8 : vector<1x8x1xf32> to vector<8x1xf32>
    %10 = vector.broadcast %9 : vector<8x1xf32> to vector<8x128xf32>
    %11 = arith.mulf %7, %10 : vector<8x128xf32>
    %c0_9 = arith.constant 0 : index
    %c0_10 = arith.constant 0 : index
    %c0_11 = arith.constant 0 : index
    %12 = vector.load %arg4[%c0_9, %c0_10, %c0_11] : memref<3x8x1xf32, #tpu.memory_space<vmem>>, vector<1x8x1xf32>
    %13 = vector.shape_cast %12 : vector<1x8x1xf32> to vector<8x1xf32>
    %14 = vector.broadcast %13 : vector<8x1xf32> to vector<8x128xf32>
    %15 = arith.addf %11, %14 : vector<8x128xf32>
    %c0_12 = arith.constant 0 : index
    %c0_13 = arith.constant 0 : index
    %c0_14 = arith.constant 0 : index
    %16 = vector.load %arg5[%c0_12, %c0_13, %c0_14] : memref<2x32x128xf32, #tpu.memory_space<vmem>>, vector<1x8x128xf32>
    %17 = vector.shape_cast %16 : vector<1x8x128xf32> to vector<8x128xf32>
    %18 = vector.shape_cast %15 : vector<8x128xf32> to vector<1x8x128xf32>
    tpu.vector_store %arg5[%c0_12, %c0_13, %c0_14], %18 {strides = array<i32>} : memref<2x32x128xf32, #tpu.memory_space<vmem>>, vector<1x8x128xf32>,
    %c0_15 = arith.constant 0 : index
    %c8 = arith.constant 8 : index
    %c0_16 = arith.constant 0 : index
    %19 = vector.load %arg1[%c0_15, %c8, %c0_16] : memref<2x32x128xf32, #tpu.memory_space<vmem>>, vector<1x8x128xf32>
    %20 = vector.shape_cast %19 : vector<1x8x128xf32> to vector<8x128xf32>
    %21 = arith.addf %15, %20 : vector<8x128xf32>
    %22 = arith.truncf %21 : vector<8x128xf32> to vector<8x128xbf16>
    %c1 = arith.constant 1 : index
    %c0_17 = arith.constant 0 : index
    %c0_18 = arith.constant 0 : index
    %23 = vector.load %arg2[%c1, %c0_17, %c0_18] : memref<3x8x8xbf16, #tpu.memory_space<vmem>>, vector<1x8x8xbf16>
    %24 = vector.shape_cast %23 : vector<1x8x8xbf16> to vector<8x8xbf16>
    %cst_19 = arith.constant dense<0.000000e+00> : vector<8x128xf32>
    %25 = tpu.matmul %24, %22, %cst_19 {dimension_numbers = #tpu.dot_dimension_numbers<[1], [0], [0], [1], [0, 0, 1, 1], [], []>} : vector<8x8xbf16>, vector<8x128xbf16>, vector<8x128xf32> -> vector<8x128xf32>
    %cst_20 = arith.constant 0.000000e+00 : f32
    %26 = vector.broadcast %cst_20 : f32 to vector<8x128xf32>
    %27 = arith.maximumf %25, %26 : vector<8x128xf32>
    %c1_21 = arith.constant 1 : index
    %c0_22 = arith.constant 0 : index
    %c0_23 = arith.constant 0 : index
    %28 = vector.load %arg3[%c1_21, %c0_22, %c0_23] : memref<3x8x1xf32, #tpu.memory_space<vmem>>, vector<1x8x1xf32>
    %29 = vector.shape_cast %28 : vector<1x8x1xf32> to vector<8x1xf32>
    %30 = vector.broadcast %29 : vector<8x1xf32> to vector<8x128xf32>
    %31 = arith.mulf %27, %30 : vector<8x128xf32>
    %c1_24 = arith.constant 1 : index
    %c0_25 = arith.constant 0 : index
    %c0_26 = arith.constant 0 : index
    %32 = vector.load %arg4[%c1_24, %c0_25, %c0_26] : memref<3x8x1xf32, #tpu.memory_space<vmem>>, vector<1x8x1xf32>
    %33 = vector.shape_cast %32 : vector<1x8x1xf32> to vector<8x1xf32>
    %34 = vector.broadcast %33 : vector<8x1xf32> to vector<8x128xf32>
    %35 = arith.addf %31, %34 : vector<8x128xf32>
    %c0_27 = arith.constant 0 : index
    %c8_28 = arith.constant 8 : index
    %c0_29 = arith.constant 0 : index
    %36 = vector.load %arg5[%c0_27, %c8_28, %c0_29] : memref<2x32x128xf32, #tpu.memory_space<vmem>>, vector<1x8x128xf32>
    %37 = vector.shape_cast %36 : vector<1x8x128xf32> to vector<8x128xf32>
    %38 = vector.shape_cast %35 : vector<8x128xf32> to vector<1x8x128xf32>
    tpu.vector_store %arg5[%c0_27, %c8_28, %c0_29], %38 {strides = array<i32>} : memref<2x32x128xf32, #tpu.memory_space<vmem>>, vector<1x8x128xf32>,
    %c0_30 = arith.constant 0 : index
    %c16 = arith.constant 16 : index
    %c0_31 = arith.constant 0 : index
    %39 = vector.load %arg1[%c0_30, %c16, %c0_31] : memref<2x32x128xf32, #tpu.memory_space<vmem>>, vector<1x8x128xf32>
    %40 = vector.shape_cast %39 : vector<1x8x128xf32> to vector<8x128xf32>
    %41 = arith.addf %35, %40 : vector<8x128xf32>
    %42 = arith.truncf %41 : vector<8x128xf32> to vector<8x128xbf16>
    %c2 = arith.constant 2 : index
    %c0_32 = arith.constant 0 : index
    %c0_33 = arith.constant 0 : index
    %43 = vector.load %arg2[%c2, %c0_32, %c0_33] : memref<3x8x8xbf16, #tpu.memory_space<vmem>>, vector<1x8x8xbf16>
    %44 = vector.shape_cast %43 : vector<1x8x8xbf16> to vector<8x8xbf16>
    %cst_34 = arith.constant dense<0.000000e+00> : vector<8x128xf32>
    %45 = tpu.matmul %44, %42, %cst_34 {dimension_numbers = #tpu.dot_dimension_numbers<[1], [0], [0], [1], [0, 0, 1, 1], [], []>} : vector<8x8xbf16>, vector<8x128xbf16>, vector<8x128xf32> -> vector<8x128xf32>
    %cst_35 = arith.constant 0.000000e+00 : f32
    %46 = vector.broadcast %cst_35 : f32 to vector<8x128xf32>
    %47 = arith.maximumf %45, %46 : vector<8x128xf32>
    %c2_36 = arith.constant 2 : index
    %c0_37 = arith.constant 0 : index
    %c0_38 = arith.constant 0 : index
    %48 = vector.load %arg3[%c2_36, %c0_37, %c0_38] : memref<3x8x1xf32, #tpu.memory_space<vmem>>, vector<1x8x1xf32>
    %49 = vector.shape_cast %48 : vector<1x8x1xf32> to vector<8x1xf32>
    %50 = vector.broadcast %49 : vector<8x1xf32> to vector<8x128xf32>
    %51 = arith.mulf %47, %50 : vector<8x128xf32>
    %c2_39 = arith.constant 2 : index
    %c0_40 = arith.constant 0 : index
    %c0_41 = arith.constant 0 : index
    %52 = vector.load %arg4[%c2_39, %c0_40, %c0_41] : memref<3x8x1xf32, #tpu.memory_space<vmem>>, vector<1x8x1xf32>
    %53 = vector.shape_cast %52 : vector<1x8x1xf32> to vector<8x1xf32>
    %54 = vector.broadcast %53 : vector<8x1xf32> to vector<8x128xf32>
    %55 = arith.addf %51, %54 : vector<8x128xf32>
    %c0_42 = arith.constant 0 : index
    %c16_43 = arith.constant 16 : index
    %c0_44 = arith.constant 0 : index
    %56 = vector.load %arg5[%c0_42, %c16_43, %c0_44] : memref<2x32x128xf32, #tpu.memory_space<vmem>>, vector<1x8x128xf32>
    %57 = vector.shape_cast %56 : vector<1x8x128xf32> to vector<8x128xf32>
    %58 = vector.shape_cast %55 : vector<8x128xf32> to vector<1x8x128xf32>
    tpu.vector_store %arg5[%c0_42, %c16_43, %c0_44], %58 {strides = array<i32>} : memref<2x32x128xf32, #tpu.memory_space<vmem>>, vector<1x8x128xf32>,
    %c0_45 = arith.constant 0 : index
    %c24 = arith.constant 24 : index
    %c0_46 = arith.constant 0 : index
    %59 = vector.load %arg1[%c0_45, %c24, %c0_46] : memref<2x32x128xf32, #tpu.memory_space<vmem>>, vector<1x8x128xf32>
    %60 = vector.shape_cast %59 : vector<1x8x128xf32> to vector<8x128xf32>
    %c0_47 = arith.constant 0 : index
    %c24_48 = arith.constant 24 : index
    %c0_49 = arith.constant 0 : index
    %61 = vector.load %arg5[%c0_47, %c24_48, %c0_49] : memref<2x32x128xf32, #tpu.memory_space<vmem>>, vector<1x8x128xf32>
    %62 = vector.shape_cast %61 : vector<1x8x128xf32> to vector<8x128xf32>
    %63 = vector.shape_cast %60 : vector<8x128xf32> to vector<1x8x128xf32>
    tpu.vector_store %arg5[%c0_47, %c24_48, %c0_49], %63 {strides = array<i32>} : memref<2x32x128xf32, #tpu.memory_space<vmem>>, vector<1x8x128xf32>,
    %c1_50 = arith.constant 1 : index
    %c0_51 = arith.constant 0 : index
    %c0_52 = arith.constant 0 : index
    %64 = vector.load %arg1[%c1_50, %c0_51, %c0_52] : memref<2x32x128xf32, #tpu.memory_space<vmem>>, vector<1x8x128xf32>
    %65 = vector.shape_cast %64 : vector<1x8x128xf32> to vector<8x128xf32>
    %66 = arith.truncf %65 : vector<8x128xf32> to vector<8x128xbf16>
    %c0_53 = arith.constant 0 : index
    %c0_54 = arith.constant 0 : index
    %c0_55 = arith.constant 0 : index
    %67 = vector.load %arg2[%c0_53, %c0_54, %c0_55] : memref<3x8x8xbf16, #tpu.memory_space<vmem>>, vector<1x8x8xbf16>
    %68 = vector.shape_cast %67 : vector<1x8x8xbf16> to vector<8x8xbf16>
    %cst_56 = arith.constant dense<0.000000e+00> : vector<8x128xf32>
    %69 = tpu.matmul %68, %66, %cst_56 {dimension_numbers = #tpu.dot_dimension_numbers<[1], [0], [0], [1], [0, 0, 1, 1], [], []>} : vector<8x8xbf16>, vector<8x128xbf16>, vector<8x128xf32> -> vector<8x128xf32>
    %cst_57 = arith.constant 0.000000e+00 : f32
    %70 = vector.broadcast %cst_57 : f32 to vector<8x128xf32>
    %71 = arith.maximumf %69, %70 : vector<8x128xf32>
    %c0_58 = arith.constant 0 : index
    %c0_59 = arith.constant 0 : index
    %c0_60 = arith.constant 0 : index
    %72 = vector.load %arg3[%c0_58, %c0_59, %c0_60] : memref<3x8x1xf32, #tpu.memory_space<vmem>>, vector<1x8x1xf32>
    %73 = vector.shape_cast %72 : vector<1x8x1xf32> to vector<8x1xf32>
    %74 = vector.broadcast %73 : vector<8x1xf32> to vector<8x128xf32>
    %75 = arith.mulf %71, %74 : vector<8x128xf32>
    %c0_61 = arith.constant 0 : index
    %c0_62 = arith.constant 0 : index
    %c0_63 = arith.constant 0 : index
    %76 = vector.load %arg4[%c0_61, %c0_62, %c0_63] : memref<3x8x1xf32, #tpu.memory_space<vmem>>, vector<1x8x1xf32>
    %77 = vector.shape_cast %76 : vector<1x8x1xf32> to vector<8x1xf32>
    %78 = vector.broadcast %77 : vector<8x1xf32> to vector<8x128xf32>
    %79 = arith.addf %75, %78 : vector<8x128xf32>
    %c1_64 = arith.constant 1 : index
    %c0_65 = arith.constant 0 : index
    %c0_66 = arith.constant 0 : index
    %80 = vector.load %arg5[%c1_64, %c0_65, %c0_66] : memref<2x32x128xf32, #tpu.memory_space<vmem>>, vector<1x8x128xf32>
    %81 = vector.shape_cast %80 : vector<1x8x128xf32> to vector<8x128xf32>
    %82 = vector.shape_cast %79 : vector<8x128xf32> to vector<1x8x128xf32>
    tpu.vector_store %arg5[%c1_64, %c0_65, %c0_66], %82 {strides = array<i32>} : memref<2x32x128xf32, #tpu.memory_space<vmem>>, vector<1x8x128xf32>,
    %c1_67 = arith.constant 1 : index
    %c8_68 = arith.constant 8 : index
    %c0_69 = arith.constant 0 : index
    %83 = vector.load %arg1[%c1_67, %c8_68, %c0_69] : memref<2x32x128xf32, #tpu.memory_space<vmem>>, vector<1x8x128xf32>
    %84 = vector.shape_cast %83 : vector<1x8x128xf32> to vector<8x128xf32>
    %85 = arith.addf %79, %84 : vector<8x128xf32>
    %86 = arith.truncf %85 : vector<8x128xf32> to vector<8x128xbf16>
    %c1_70 = arith.constant 1 : index
    %c0_71 = arith.constant 0 : index
    %c0_72 = arith.constant 0 : index
    %87 = vector.load %arg2[%c1_70, %c0_71, %c0_72] : memref<3x8x8xbf16, #tpu.memory_space<vmem>>, vector<1x8x8xbf16>
    %88 = vector.shape_cast %87 : vector<1x8x8xbf16> to vector<8x8xbf16>
    %cst_73 = arith.constant dense<0.000000e+00> : vector<8x128xf32>
    %89 = tpu.matmul %88, %86, %cst_73 {dimension_numbers = #tpu.dot_dimension_numbers<[1], [0], [0], [1], [0, 0, 1, 1], [], []>} : vector<8x8xbf16>, vector<8x128xbf16>, vector<8x128xf32> -> vector<8x128xf32>
    %cst_74 = arith.constant 0.000000e+00 : f32
    %90 = vector.broadcast %cst_74 : f32 to vector<8x128xf32>
    %91 = arith.maximumf %89, %90 : vector<8x128xf32>
    %c1_75 = arith.constant 1 : index
    %c0_76 = arith.constant 0 : index
    %c0_77 = arith.constant 0 : index
    %92 = vector.load %arg3[%c1_75, %c0_76, %c0_77] : memref<3x8x1xf32, #tpu.memory_space<vmem>>, vector<1x8x1xf32>
    %93 = vector.shape_cast %92 : vector<1x8x1xf32> to vector<8x1xf32>
    %94 = vector.broadcast %93 : vector<8x1xf32> to vector<8x128xf32>
    %95 = arith.mulf %91, %94 : vector<8x128xf32>
    %c1_78 = arith.constant 1 : index
    %c0_79 = arith.constant 0 : index
    %c0_80 = arith.constant 0 : index
    %96 = vector.load %arg4[%c1_78, %c0_79, %c0_80] : memref<3x8x1xf32, #tpu.memory_space<vmem>>, vector<1x8x1xf32>
    %97 = vector.shape_cast %96 : vector<1x8x1xf32> to vector<8x1xf32>
    %98 = vector.broadcast %97 : vector<8x1xf32> to vector<8x128xf32>
    %99 = arith.addf %95, %98 : vector<8x128xf32>
    %c1_81 = arith.constant 1 : index
    %c8_82 = arith.constant 8 : index
    %c0_83 = arith.constant 0 : index
    %100 = vector.load %arg5[%c1_81, %c8_82, %c0_83] : memref<2x32x128xf32, #tpu.memory_space<vmem>>, vector<1x8x128xf32>
    %101 = vector.shape_cast %100 : vector<1x8x128xf32> to vector<8x128xf32>
    %102 = vector.shape_cast %99 : vector<8x128xf32> to vector<1x8x128xf32>
    tpu.vector_store %arg5[%c1_81, %c8_82, %c0_83], %102 {strides = array<i32>} : memref<2x32x128xf32, #tpu.memory_space<vmem>>, vector<1x8x128xf32>,
    %c1_84 = arith.constant 1 : index
    %c16_85 = arith.constant 16 : index
    %c0_86 = arith.constant 0 : index
    %103 = vector.load %arg1[%c1_84, %c16_85, %c0_86] : memref<2x32x128xf32, #tpu.memory_space<vmem>>, vector<1x8x128xf32>
    %104 = vector.shape_cast %103 : vector<1x8x128xf32> to vector<8x128xf32>
    %105 = arith.addf %99, %104 : vector<8x128xf32>
    %106 = arith.truncf %105 : vector<8x128xf32> to vector<8x128xbf16>
    %c2_87 = arith.constant 2 : index
    %c0_88 = arith.constant 0 : index
    %c0_89 = arith.constant 0 : index
    %107 = vector.load %arg2[%c2_87, %c0_88, %c0_89] : memref<3x8x8xbf16, #tpu.memory_space<vmem>>, vector<1x8x8xbf16>
    %108 = vector.shape_cast %107 : vector<1x8x8xbf16> to vector<8x8xbf16>
    %cst_90 = arith.constant dense<0.000000e+00> : vector<8x128xf32>
    %109 = tpu.matmul %108, %106, %cst_90 {dimension_numbers = #tpu.dot_dimension_numbers<[1], [0], [0], [1], [0, 0, 1, 1], [], []>} : vector<8x8xbf16>, vector<8x128xbf16>, vector<8x128xf32> -> vector<8x128xf32>
    %cst_91 = arith.constant 0.000000e+00 : f32
    %110 = vector.broadcast %cst_91 : f32 to vector<8x128xf32>
    %111 = arith.maximumf %109, %110 : vector<8x128xf32>
    %c2_92 = arith.constant 2 : index
    %c0_93 = arith.constant 0 : index
    %c0_94 = arith.constant 0 : index
    %112 = vector.load %arg3[%c2_92, %c0_93, %c0_94] : memref<3x8x1xf32, #tpu.memory_space<vmem>>, vector<1x8x1xf32>
    %113 = vector.shape_cast %112 : vector<1x8x1xf32> to vector<8x1xf32>
    %114 = vector.broadcast %113 : vector<8x1xf32> to vector<8x128xf32>
    %115 = arith.mulf %111, %114 : vector<8x128xf32>
    %c2_95 = arith.constant 2 : index
    %c0_96 = arith.constant 0 : index
    %c0_97 = arith.constant 0 : index
    %116 = vector.load %arg4[%c2_95, %c0_96, %c0_97] : memref<3x8x1xf32, #tpu.memory_space<vmem>>, vector<1x8x1xf32>
    %117 = vector.shape_cast %116 : vector<1x8x1xf32> to vector<8x1xf32>
    %118 = vector.broadcast %117 : vector<8x1xf32> to vector<8x128xf32>
    %119 = arith.addf %115, %118 : vector<8x128xf32>
    %c1_98 = arith.constant 1 : index
    %c16_99 = arith.constant 16 : index
    %c0_100 = arith.constant 0 : index
    %120 = vector.load %arg5[%c1_98, %c16_99, %c0_100] : memref<2x32x128xf32, #tpu.memory_space<vmem>>, vector<1x8x128xf32>
    %121 = vector.shape_cast %120 : vector<1x8x128xf32> to vector<8x128xf32>
    %122 = vector.shape_cast %119 : vector<8x128xf32> to vector<1x8x128xf32>
    tpu.vector_store %arg5[%c1_98, %c16_99, %c0_100], %122 {strides = array<i32>} : memref<2x32x128xf32, #tpu.memory_space<vmem>>, vector<1x8x128xf32>,
    %c1_101 = arith.constant 1 : index
    %c24_102 = arith.constant 24 : index
    %c0_103 = arith.constant 0 : index
    %123 = vector.load %arg1[%c1_101, %c24_102, %c0_103] : memref<2x32x128xf32, #tpu.memory_space<vmem>>, vector<1x8x128xf32>
    %124 = vector.shape_cast %123 : vector<1x8x128xf32> to vector<8x128xf32>
    %c1_104 = arith.constant 1 : index
    %c24_105 = arith.constant 24 : index
    %c0_106 = arith.constant 0 : index
    %125 = vector.load %arg5[%c1_104, %c24_105, %c0_106] : memref<2x32x128xf32, #tpu.memory_space<vmem>>, vector<1x8x128xf32>
    %126 = vector.shape_cast %125 : vector<1x8x128xf32> to vector<8x128xf32>
    %127 = vector.shape_cast %124 : vector<8x128xf32> to vector<1x8x128xf32>
    tpu.vector_store %arg5[%c1_104, %c24_105, %c0_106], %127 {strides = array<i32>} : memref<2x32x128xf32, #tpu.memory_space<vmem>>, vector<1x8x128xf32>,
    return
  }
  func.func @transform_0(%arg0: i32) -> (i32, i32, i32) {
    %c0_i32 = arith.constant 0 : i32
    %c0_i32_0 = arith.constant 0 : i32
    %c0_i32_1 = arith.constant 0 : i32
    return %arg0, %c0_i32, %c0_i32_0 : i32, i32, i32
  }
  func.func @transform_1(%arg0: i32) -> (i32, i32, i32) {
    %c0_i32 = arith.constant 0 : i32
    %c0_i32_0 = arith.constant 0 : i32
    %c0_i32_1 = arith.constant 0 : i32
    %c0_i32_2 = arith.constant 0 : i32
    return %c0_i32, %c0_i32_0, %c0_i32_1 : i32, i32, i32
  }
  func.func @transform_2(%arg0: i32) -> (i32, i32, i32) {
    %c0_i32 = arith.constant 0 : i32
    %c0_i32_0 = arith.constant 0 : i32
    %c0_i32_1 = arith.constant 0 : i32
    %c0_i32_2 = arith.constant 0 : i32
    return %c0_i32, %c0_i32_0, %c0_i32_1 : i32, i32, i32
  }
  func.func @transform_3(%arg0: i32) -> (i32, i32, i32) {
    %c0_i32 = arith.constant 0 : i32
    %c0_i32_0 = arith.constant 0 : i32
    %c0_i32_1 = arith.constant 0 : i32
    %c0_i32_2 = arith.constant 0 : i32
    return %c0_i32, %c0_i32_0, %c0_i32_1 : i32, i32, i32
  }
  func.func @transform_4(%arg0: i32) -> (i32, i32, i32) {
    %c0_i32 = arith.constant 0 : i32
    %c0_i32_0 = arith.constant 0 : i32
    %c0_i32_1 = arith.constant 0 : i32
    return %arg0, %c0_i32, %c0_i32_0 : i32, i32, i32
  }
}

</mosaic_0001>

<bundles_post_ra>
// kernel: tpu_custom_call.1
= control target key start
LH: loop header
LB: loop body
LE: loop exit
PB: predicated region body
PF: predicated region fallthrough
CT: control target
= control target key end

     0   :  { %9 = vsyncpa [#allocation3], 0  ;;  %s687_s0 = inlined_call_operand.hbm [shape: f32[2,32,128], index: 0, kind: input, shape index: {}]   ;;  %s688_s1 = inlined_call_operand.vmem [shape: bf16[3,8,8], index: 1, kind: input, shape index: {}]   ;;  %s689_s2 = inlined_call_operand.vmem [shape: f32[3,8,1], index: 2, kind: input, shape index: {}]   ;;  %s690_s3 = inlined_call_operand.vmem [shape: f32[3,8,1], index: 3, kind: input, shape index: {}]   ;;  %s691_s4 = inlined_call_operand.hbm [shape: f32[2,32,128], index: 4, kind: output, shape index: {}]  }
   0x1   :  { %10 = vsyncpa [#allocation4], 0  ;;  %s577_s15 = smov [#allocation2]  }
   0x2   :  { %s16_s16 = sshll.u32 %s577_s15, 4  ;;  %s17_s16 = int_to_ptr.vmem [resolvable:$true] %s16_s16 }
   0x3   :  { %s541_s17 = scalar_lea.vmem %s17_s16, 1024  ;;  %p546_p1 = scmp.lt.s32.totalorder %s17_s16, %s17_s16 }
   0x4   :  { %p542_p0 = scmp.ne.s32.totalorder %s17_s16, %s541_s17  ;;  %p547_p2 = scmp.lt.s32.totalorder %s541_s17, %s541_s17 }
   0x6   :  { %p548_p3 = por %p547_p2, %p546_p1 }
   0x8   :  { %p549_p4 = pnand %p548_p3, %p542_p0 }
   0xa   :  { %552 = shalt.err (!%p549_p4)
}
   0xb   :  { %s578_s18 = smov 128   ;;  %s579_s19 = smov 8  }
   0xc   :  { %22 = dma.hbm_to_vmem [thread:$0]  %s687_s0, 1024, %s17_s16, [#allocation3], %s578_s18, %s578_s18, %s579_s19  }
   0xd   :  { %573 = dma.done.wait [#allocation3], 1024  }
   0xe   :  { %574 = vsyncadd [#allocation3], 4294966272  ;;  %v580_v0 = vmov 0.0   ;;  %vm581_vm0 = vmmov 0   ;;  %v582_v1 = vmov 0   ;;  %v33_v2 = vld [vmem:[#allocation2] sm:$0xff] }
   0xf   :  { %488 = vmatprep.subr.bf16.mxu0 %v580_v0  ;;  %490 = vmatprep.mubr.msk.bf16.mxu0 %vm581_vm0, %v580_v0  ;;  %vm40_vm1 = vcmask 1043456   ;;  %v85_v3 = vld [vmem:[%s689_s2] sm:$0xff]  ;;  %v34_v4 = vpack.c.bf16 %v33_v2, %v33_v2  ;;  %v470_v5 = vld [vmem:[%s689_s2 + $0x8] sm:$0xff]  ;;  %vm36_vm2 = vcmask 64512   ;;  %v465_v9 = vld [vmem:[%s689_s2 + $0x10] sm:$0xff]  ;;  %s583_s17 = smov [#allocation5]  }
  0x10   :  { %531 = vset.pattern.permute.xlu0 %v582_v1  ;;  %494 = vmatprep.subr.bf16.mxu1 %v580_v0  ;;  %v92_v6 = vld [vmem:[%s690_s3] sm:$0xff]  ;;  %v466_v10 = vld [vmem:[%s690_s3 + $0x10] sm:$0xff]  ;;  %v462_v11 = vld [vmem:[%s690_s3 + $0x8] sm:$0xff]  ;;  %s446_s20 = sshll.u32 %s583_s17, 4  ;;  %s447_s20 = int_to_ptr.vmem [resolvable:$true] %s446_s20 }
  0x11   :  { %496 = vmatprep.mubr.msk.bf16.mxu1 %vm581_vm0, %v580_v0  ;;  %532 = vset.pattern.permute.xlu1 %v582_v1  ;;  %v42_v7 = vsel %vm40_vm1, %v34_v4, 0  ;;  %v35_v8 = vld [vmem:[%s688_s1] sm:$0xf]  ;;  %v100_v19 = vld [vmem:[#allocation2 + $0x8] sm:$0xff]  ;;  %v459_v27 = vld [vmem:[%s688_s1 + $0x4] sm:$0xf]  ;;  %p558_p6 = scmp.lt.s32.totalorder %s447_s20, %s447_s20 }
  0x12   :  { %88 = vperm.xlu0 %531, %v85_v3   ;;  %156 = vperm.xlu1 %532, %v470_v5   ;;  %v241_v22 = vld [vmem:[#allocation2 + $0x20] sm:$0xff]  ;;  %v169_v37 = vld [vmem:[#allocation2 + $0x10] sm:$0xff]  ;;  %v463_v50 = vld [vmem:[%s688_s1 + $0x8] sm:$0xf] }
  0x13   :  { %489 = vmatpush3.bf16.msra.mxu0 %v42_v7  ;;  %v242_v25 = vpack.c.bf16 %v241_v22, %v241_v22  ;;  %v243_v29 = vld [vmem:[%s688_s1] sm:$0xf]  ;;  %v307_v51 = vld [vmem:[#allocation2 + $0x28] sm:$0xff]  ;;  %v468_v57 = vld [vmem:[%s688_s1 + $0x4] sm:$0xf] }
  0x14   :  { %500 = vmatprep.subr.bf16.mxu0 %v580_v0 }
  0x15   :  { %v248_v28 = vsel %vm40_vm1, %v242_v25, 0 }
  0x16   :  { %95 = vperm.xlu0 %531, %v92_v6   ;;  %491 = vmatmul.mubr.msk.bf16.vlgmr.msra.gmra.mxu0 %vm36_vm2, %v35_v8 }
  0x17   :  { %502 = vmatprep.mubr.msk.bf16.mxu0 %vm581_vm0, %v580_v0  ;;  %164 = vperm.xlu1 %532, %v462_v11  }
  0x1a   :  { %294 = vperm.xlu0 %531, %v85_v3  }
  0x1b   :  { %301 = vperm.xlu1 %532, %v92_v6  }
  0x1e   :  { %361 = vperm.xlu0 %531, %v470_v5  }
  0x1f   :  { %368 = vperm.xlu1 %532, %v462_v11  }
  0x22   :  { %225 = vperm.xlu0 %531, %v465_v9  }
  0x23   :  { %427 = vperm.xlu1 %532, %v465_v9  }
  0x26   :  { %233 = vperm.xlu0 %531, %v466_v10  }
  0x27   :  { %434 = vperm.xlu1 %532, %v466_v10   ;;  %v373_v10 = vld [vmem:[#allocation2 + $0x30] sm:$0xff] }
  0x8d   :  { %v89_v12 = vpop.permute.xlu0 %88  ;;  %v157_v30 = vpop.permute.xlu1 %156 }
  0x91   :  { %v96_v17 = vpop.permute.xlu0 %95 }
  0x92   :  { %v165_v35 = vpop.permute.xlu1 %164 }
  0x95   :  { %v295_v44 = vpop.permute.xlu0 %294 }
  0x96   :  { %v302_v48 = vpop.permute.xlu1 %301 }
  0x99   :  { %v362_v58 = vpop.permute.xlu0 %361 }
  0x9a   :  { %v369_v8 = vpop.permute.xlu1 %368 }
  0x9d   :  { %v226_v59 = vpop.permute.xlu0 %225 }
  0xa1   :  { %v234_v1 = vpop.permute.xlu0 %233 }
  0xd6   :  { %v78_v13 = vpop.f32.mrf.mxu0 }
  0xd7   :  { %v84_v14 = vmax.f32 %v78_v13, 0.0 }
  0xd8   :  { %v492_v15 = vpop.f32.mrf.mxu0 }
  0xd9   :  { %v91_v16 = vmul.f32 %v89_v12, %v84_v14 }
  0xda   :  { %v81_v18 = vpop.f32.mrf.mxu0 }
  0xdb   :  { %v98_v20 = vadd.f32 %v96_v17, %v91_v16  ;;  %v472_v16 = vld [vmem:[%s688_s1 + $0x8] sm:$0xf]  ;;  %v238_v17 = vld [vmem:[#allocation2 + $0x18] sm:$0xff]  ;;  %s553_s1 = scalar_lea.vmem %s447_s20, 1024 }
  0xdc   :  { %v493_v21 = vpop.f32.mrf.mxu0  ;;  %v439_v18 = vld [vmem:[#allocation2 + $0x38] sm:$0xff]  ;;  %239 = vst [vmem:[#allocation5 + $0x18] sm:$0xff] %v238_v17  ;;  %p554_p5 = scmp.ne.s32.totalorder %s447_s20, %s553_s1  ;;  %p559_p7 = scmp.lt.s32.totalorder %s553_s1, %s553_s1 }
  0xdd   :  { %99 = vst [vmem:[#allocation5] sm:$0xff] %v98_v20  ;;  %v101_v23 = vadd.f32 %v100_v19, %v98_v20  ;;  %440 = vst [vmem:[#allocation5 + $0x38] sm:$0xff] %v439_v18  ;;  %v428_v19 = vpop.permute.xlu1 %427 }
  0xde   :  { %p560_p8 = por %p559_p7, %p558_p6 }
  0xdf   :  { %v102_v24 = vpack.c.bf16 %v101_v23, %v101_v23 }
  0xe0   :  { %p561_p9 = pnand %p560_p8, %p554_p5 }
  0xe1   :  { %v109_v26 = vsel %vm40_vm1, %v102_v24, 0  ;;  %v435_v24 = vpop.permute.xlu1 %434 }
  0xe2   :  { %495 = vmatpush3.bf16.msra.mxu1 %v109_v26 }
  0xe3   :  { %506 = vmatprep.subr.bf16.mxu1 %v580_v0 }
  0xe5   :  { %497 = vmatmul.mubr.msk.bf16.vlgmr.msra.gmra.mxu1 %vm36_vm2, %v459_v27 }
  0xe6   :  { %507 = vmatpush3.bf16.msra.mxu1 %v248_v28  ;;  %508 = vmatprep.mubr.msk.bf16.mxu1 %vm581_vm0, %v580_v0 }
  0xe7   :  { %518 = vmatprep.subr.bf16.mxu1 %v580_v0 }
  0xed   :  { %509 = vmatmul.mubr.msk.bf16.vlgmr.msra.gmra.mxu1 %vm36_vm2, %v243_v29 }
  0xee   :  { %520 = vmatprep.mubr.msk.bf16.mxu1 %vm581_vm0, %v580_v0 }
 0x1a5   :  { %v145_v31 = vpop.f32.mrf.mxu1 }
 0x1a6   :  { %v151_v32 = vmax.f32 %v145_v31, 0.0 }
 0x1a7   :  { %v498_v33 = vpop.f32.mrf.mxu1 }
 0x1a8   :  { %v159_v34 = vmul.f32 %v157_v30, %v151_v32 }
 0x1a9   :  { %v148_v36 = vpop.f32.mrf.mxu1 }
 0x1aa   :  { %v167_v38 = vadd.f32 %v165_v35, %v159_v34 }
 0x1ab   :  { %v499_v39 = vpop.f32.mrf.mxu1 }
 0x1ac   :  { %168 = vst [vmem:[#allocation5 + $0x8] sm:$0xff] %v167_v38  ;;  %v170_v40 = vadd.f32 %v169_v37, %v167_v38 }
 0x1ad   :  { %v284_v41 = vpop.f32.mrf.mxu1 }
 0x1ae   :  { %v290_v42 = vmax.f32 %v284_v41, 0.0  ;;  %v171_v43 = vpack.c.bf16 %v170_v40, %v170_v40 }
 0x1af   :  { %v510_v45 = vpop.f32.mrf.mxu1 }
 0x1b0   :  { %v297_v46 = vmul.f32 %v295_v44, %v290_v42  ;;  %v178_v47 = vsel %vm40_vm1, %v171_v43, 0 }
 0x1b1   :  { %501 = vmatpush3.bf16.msra.mxu0 %v178_v47  ;;  %v287_v49 = vpop.f32.mrf.mxu1 }
 0x1b2   :  { %v304_v52 = vadd.f32 %v302_v48, %v297_v46  ;;  %512 = vmatprep.subr.bf16.mxu0 %v580_v0 }
 0x1b3   :  { %v511_v53 = vpop.f32.mrf.mxu1 }
 0x1b4   :  { %306 = vst [vmem:[#allocation5 + $0x20] sm:$0xff] %v304_v52  ;;  %503 = vmatmul.mubr.msk.bf16.vlgmr.msra.gmra.mxu0 %vm36_vm2, %v463_v50  ;;  %v308_v54 = vadd.f32 %v307_v51, %v304_v52 }
 0x1b5   :  { %514 = vmatprep.mubr.msk.bf16.mxu0 %vm581_vm0, %v580_v0 }
 0x1b6   :  { %v309_v55 = vpack.c.bf16 %v308_v54, %v308_v54 }
 0x1b8   :  { %v315_v56 = vsel %vm40_vm1, %v309_v55, 0 }
 0x1b9   :  { %513 = vmatpush3.bf16.msra.mxu0 %v315_v56 }
 0x1bc   :  { %515 = vmatmul.mubr.msk.bf16.vlgmr.msra.gmra.mxu0 %vm36_vm2, %v468_v57 }
 0x274   :  { %v214_v60 = vpop.f32.mrf.mxu0 }
 0x275   :  { %v220_v61 = vmax.f32 %v214_v60, 0.0 }
 0x276   :  { %v504_v62 = vpop.f32.mrf.mxu0 }
 0x277   :  { %v228_v63 = vmul.f32 %v226_v59, %v220_v61 }
 0x278   :  { %v217_v2 = vpop.f32.mrf.mxu0 }
 0x279   :  { %v236_v3 = vadd.f32 %v234_v1, %v228_v63 }
 0x27a   :  { %v505_v0 = vpop.f32.mrf.mxu0 }
 0x27b   :  { %237 = vst [vmem:[#allocation5 + $0x10] sm:$0xff] %v236_v3 }
 0x27c   :  { %v351_v4 = vpop.f32.mrf.mxu0 }
 0x27d   :  { %v357_v5 = vmax.f32 %v351_v4, 0.0 }
 0x27e   :  { %v516_v6 = vpop.f32.mrf.mxu0 }
 0x27f   :  { %v364_v7 = vmul.f32 %v362_v58, %v357_v5 }
 0x280   :  { %v354_v9 = vpop.f32.mrf.mxu0 }
 0x281   :  { %v371_v11 = vadd.f32 %v369_v8, %v364_v7 }
 0x282   :  { %v517_v12 = vpop.f32.mrf.mxu0 }
 0x283   :  { %372 = vst [vmem:[#allocation5 + $0x28] sm:$0xff] %v371_v11  ;;  %v374_v13 = vadd.f32 %v373_v10, %v371_v11 }
 0x285   :  { %v375_v14 = vpack.c.bf16 %v374_v13, %v374_v13 }
 0x287   :  { %v381_v15 = vsel %vm40_vm1, %v375_v14, 0 }
 0x288   :  { %519 = vmatpush3.bf16.msra.mxu1 %v381_v15 }
 0x28b   :  { %521 = vmatmul.mubr.msk.bf16.vlgmr.msra.gmra.mxu1 %vm36_vm2, %v472_v16 }
 0x34b   :  { %v417_v20 = vpop.f32.mrf.mxu1 }
 0x34c   :  { %v423_v21 = vmax.f32 %v417_v20, 0.0 }
 0x34d   :  { %v522_v22 = vpop.f32.mrf.mxu1 }
 0x34e   :  { %v430_v23 = vmul.f32 %v428_v19, %v423_v21 }
 0x34f   :  { %v420_v25 = vpop.f32.mrf.mxu1 }
 0x350   :  { %v437_v26 = vadd.f32 %v435_v24, %v430_v23 }
 0x351   :  { %v523_v27 = vpop.f32.mrf.mxu1 }
 0x352   :  { %438 = vst [vmem:[#allocation5 + $0x30] sm:$0xff] %v437_v26 }
 0x353   :  { %564 = shalt.err (!%p561_p9)
}
 0x354   :  { %452 = dma.vmem_to_hbm [thread:$0]  %s447_s20, 1024, %s691_s4, [#allocation4], %s578_s18, %s578_s18, %s579_s19  }
 0x355   :  { %575 = dma.done.wait [#allocation4], 1024  }
 0x356   :  { %576 = vsyncadd [#allocation4], 4294966272 }
 0x357   :  { %456 = vsyncpa [#allocation3], 1 }
 0x358   :  { %457 = vsyncpa [#allocation4], 1 }

</bundles_post_ra>
